<compile_context>
chip_gen: v5e
topology: v5e:2x2
jax: 0.10.0
libtpu: 0.0.40
codegen_flags: <defaults>
</compile_context>

<pallas_src>
import functools

import jax
import jax.numpy as jnp
from jax.experimental import pallas as pl
from jax.experimental.pallas import tpu as pltpu


# ----------------------------- Pallas kernel -------------------------------


def _adaptive_instnorm_kernel(x_ref, gb_ref, o_ref, *, eps):
    # x_ref:  (1, TC, HW) tile of the input, native dtype (channels on sublanes,
    #         spatial on lanes).
    # gb_ref: (1, 2, TC, 1) packed (gamma, beta) for these channels, f32.
    # o_ref:  (1, TC, HW), same dtype as the input.
    x = x_ref[0].astype(jnp.float32)                                 # (TC, HW)

    mean = jnp.mean(x, axis=-1, keepdims=True)                       # (TC, 1)
    var = jnp.mean(jnp.square(x - mean), axis=-1, keepdims=True)     # biased var
    inv = jax.lax.rsqrt(var + eps)                                   # EUP slot

    gamma = gb_ref[0, 0]                                             # (TC, 1)
    beta = gb_ref[0, 1]                                              # (TC, 1)

    # Fold normalization + adaptive affine into one per-element FMA.
    scale = inv * (1.0 + gamma)                                      # (TC, 1)
    shift = beta - mean * scale                                      # (TC, 1)
    o_ref[0] = (x * scale + shift).astype(o_ref.dtype)


# ------------------------------- Wrapper ------------------------------------


def _pick_channel_tile(C, HW, itemsize, slab_budget_bytes=6 << 20):
    """Largest channel tile whose (TC, HW) slab stays under the per-buffer
    budget (in+out double-buffered ~= 4 slabs < 32 MiB scoped-VMEM default)."""
    if C * HW * itemsize <= slab_budget_bytes:
        return C
    tc = (slab_budget_bytes // (HW * itemsize)) // 16 * 16  # multiple of 16
    return int(max(16, min(tc, C)))


def adaptive_norm_forward(x_nchw, y, fc_w, fc_b, eps=1e-5):
    """AdaptiveNorm forward. x:(N,C,H,W) any float dtype, y:(N,cond_dims)."""
    N, C, H, W = x_nchw.shape
    HW = H * W

    # Tiny projection of the conditional input: a handful of flops, so it is
    # computed in plain XLA (no dedicated pallas_call).  Packed so that
    # gb[:, 0] = gamma, gb[:, 1] = beta, channels on the sublane axis.
    gb = (y.astype(jnp.float32) @ fc_w.astype(jnp.float32)
          + fc_b.astype(jnp.float32))                                # (N, 2C)
    gb = gb.reshape(N, 2, C, 1)

    x3 = x_nchw.reshape(N, C, HW)        # native dtype, no upcast in the wrapper

    tc = _pick_channel_tile(C, HW, x_nchw.dtype.itemsize)
    grid = (N, pl.cdiv(C, tc))

    out = pl.pallas_call(
        functools.partial(_adaptive_instnorm_kernel, eps=eps),
        out_shape=jax.ShapeDtypeStruct((N, C, HW), x_nchw.dtype),
        grid=grid,
        in_specs=[
            pl.BlockSpec((1, tc, HW), lambda n, c: (n, c, 0)),
            pl.BlockSpec((1, 2, tc, 1), lambda n, c: (n, 0, c, 0)),
        ],
        out_specs=pl.BlockSpec((1, tc, HW), lambda n, c: (n, c, 0)),
        compiler_params=pltpu.CompilerParams(
            dimension_semantics=("parallel", "parallel")),
    )(x3, gb)

    return out.reshape(N, C, H, W)


# ------------------------------- Reference ----------------------------------


def adaptive_norm_reference(x, y, fc_w, fc_b, eps=1e-5):
    N, C, H, W = x.shape
    gb = y @ fc_w + fc_b
    gamma = gb[:, :C].reshape(N, C, 1, 1)
    beta = gb[:, C:].reshape(N, C, 1, 1)
    mean = x.mean(axis=(2, 3), keepdims=True)
    var = ((x - mean) ** 2).mean(axis=(2, 3), keepdims=True)
    xn = (x - mean) / jnp.sqrt(var + eps)
    return xn * (1.0 + gamma) + beta


# --------------------------------- Main --------------------------------------

if __name__ == "__main__":
    N, C, H, W = 2, 4, 16, 16       # num_features = C
    cond_dims = 8

    key = jax.random.PRNGKey(0)
    kx, ky, kw, kb = jax.random.split(key, 4)

    x = jax.random.normal(kx, (N, C, H, W), dtype=jnp.float32)
    y = jax.random.normal(ky, (N, cond_dims), dtype=jnp.float32)

    # Deterministic init of fc = Linear(cond_dims, 2*num_features) params,
    # PyTorch-style uniform(-1/sqrt(fan_in), 1/sqrt(fan_in)).
    bound = 1.0 / jnp.sqrt(jnp.array(cond_dims, jnp.float32))
    fc_w = jax.random.uniform(kw, (cond_dims, 2 * C), jnp.float32, -bound, bound)
    fc_b = jax.random.uniform(kb, (2 * C,), jnp.float32, -bound, bound)

    out = adaptive_norm_forward(x, y, fc_w, fc_b)
    out = jax.block_until_ready(out)

    ref = adaptive_norm_reference(x, y, fc_w, fc_b)
    assert out.shape == (N, C, H, W)
    assert out.dtype == x.dtype
    assert jnp.allclose(out, ref, atol=1e-4, rtol=1e-4), "mismatch vs reference"

    print("KERNEL_OK")
</pallas_src>

<mosaic_0001>
module attributes {stable_mosaic.version = 11 : i64} {
  func.func @_adaptive_instnorm_kernel(%arg0: i32, %arg1: i32, %arg2: memref<1x4x256xf32, #tpu.memory_space<vmem>>, %arg3: memref<1x2x4x1xf32, #tpu.memory_space<vmem>>, %arg4: memref<1x4x256xf32, #tpu.memory_space<vmem>>) attributes {dimension_semantics = [#tpu.dimension_semantics<parallel>, #tpu.dimension_semantics<parallel>], iteration_bounds = array<i64: 2, 1>, scalar_prefetch = 0 : i64, scratch_operands = 0 : i64, tpu.core_type = #tpu.core_type<tc>, window_params = [{transform_indices = @transform_0, window_bounds = array<i64: 1, 4, 256>}, {transform_indices = @transform_1, window_bounds = array<i64: 1, 2, 4, 1>}, {transform_indices = @transform_2, window_bounds = array<i64: 1, 4, 256>}]} {
    %c0 = arith.constant 0 : index
    %c0_0 = arith.constant 0 : index
    %c0_1 = arith.constant 0 : index
    %0 = vector.load %arg2[%c0, %c0_0, %c0_1] : memref<1x4x256xf32, #tpu.memory_space<vmem>>, vector<1x4x256xf32>
    %1 = vector.shape_cast %0 : vector<1x4x256xf32> to vector<4x256xf32>
    %cst = arith.constant dense<0.000000e+00> : vector<4xf32>
    %2 = vector.multi_reduction <add>, %1, %cst [1] : vector<4x256xf32> to vector<4xf32>
    %3 = vector.shape_cast %2 : vector<4xf32> to vector<4x1xf32>
    %cst_2 = arith.constant 2.560000e+02 : f32
    %4 = vector.broadcast %cst_2 : f32 to vector<4x1xf32>
    %5 = arith.divf %3, %4 : vector<4x1xf32>
    %6 = vector.broadcast %5 : vector<4x1xf32> to vector<4x256xf32>
    %7 = arith.subf %1, %6 : vector<4x256xf32>
    %8 = arith.mulf %7, %7 : vector<4x256xf32>
    %cst_3 = arith.constant dense<0.000000e+00> : vector<4xf32>
    %9 = vector.multi_reduction <add>, %8, %cst_3 [1] : vector<4x256xf32> to vector<4xf32>
    %10 = vector.shape_cast %9 : vector<4xf32> to vector<4x1xf32>
    %cst_4 = arith.constant 2.560000e+02 : f32
    %11 = vector.broadcast %cst_4 : f32 to vector<4x1xf32>
    %12 = arith.divf %10, %11 : vector<4x1xf32>
    %cst_5 = arith.constant 9.99999974E-6 : f32
    %13 = vector.broadcast %cst_5 : f32 to vector<4x1xf32>
    %14 = arith.addf %12, %13 : vector<4x1xf32>
    %15 = math.rsqrt %14 : vector<4x1xf32>
    %c0_6 = arith.constant 0 : index
    %c0_7 = arith.constant 0 : index
    %c0_8 = arith.constant 0 : index
    %c0_9 = arith.constant 0 : index
    %16 = vector.load %arg3[%c0_6, %c0_7, %c0_8, %c0_9] : memref<1x2x4x1xf32, #tpu.memory_space<vmem>>, vector<1x1x4x1xf32>
    %17 = vector.shape_cast %16 : vector<1x1x4x1xf32> to vector<4x1xf32>
    %c0_10 = arith.constant 0 : index
    %c1 = arith.constant 1 : index
    %c0_11 = arith.constant 0 : index
    %c0_12 = arith.constant 0 : index
    %18 = vector.load %arg3[%c0_10, %c1, %c0_11, %c0_12] : memref<1x2x4x1xf32, #tpu.memory_space<vmem>>, vector<1x1x4x1xf32>
    %19 = vector.shape_cast %18 : vector<1x1x4x1xf32> to vector<4x1xf32>
    %cst_13 = arith.constant 1.000000e+00 : f32
    %20 = vector.broadcast %cst_13 : f32 to vector<4x1xf32>
    %21 = arith.addf %20, %17 : vector<4x1xf32>
    %22 = arith.mulf %15, %21 : vector<4x1xf32>
    %23 = arith.mulf %5, %22 : vector<4x1xf32>
    %24 = arith.subf %19, %23 : vector<4x1xf32>
    %25 = vector.broadcast %22 : vector<4x1xf32> to vector<4x256xf32>
    %26 = arith.mulf %1, %25 : vector<4x256xf32>
    %27 = vector.broadcast %24 : vector<4x1xf32> to vector<4x256xf32>
    %28 = arith.addf %26, %27 : vector<4x256xf32>
    %c0_14 = arith.constant 0 : index
    %c0_15 = arith.constant 0 : index
    %c0_16 = arith.constant 0 : index
    %29 = vector.load %arg4[%c0_14, %c0_15, %c0_16] : memref<1x4x256xf32, #tpu.memory_space<vmem>>, vector<1x4x256xf32>
    %30 = vector.shape_cast %29 : vector<1x4x256xf32> to vector<4x256xf32>
    %31 = vector.shape_cast %28 : vector<4x256xf32> to vector<1x4x256xf32>
    tpu.vector_store %arg4[%c0_14, %c0_15, %c0_16], %31 {strides = array<i32>} : memref<1x4x256xf32, #tpu.memory_space<vmem>>, vector<1x4x256xf32>,
    return
  }
  func.func @transform_0(%arg0: i32, %arg1: i32) -> (i32, i32, i32) {
    %c0_i32 = arith.constant 0 : i32
    %c0_i32_0 = arith.constant 0 : i32
    return %arg0, %arg1, %c0_i32 : i32, i32, i32
  }
  func.func @transform_1(%arg0: i32, %arg1: i32) -> (i32, i32, i32, i32) {
    %c0_i32 = arith.constant 0 : i32
    %c0_i32_0 = arith.constant 0 : i32
    %c0_i32_1 = arith.constant 0 : i32
    return %arg0, %c0_i32, %arg1, %c0_i32_0 : i32, i32, i32, i32
  }
  func.func @transform_2(%arg0: i32, %arg1: i32) -> (i32, i32, i32) {
    %c0_i32 = arith.constant 0 : i32
    %c0_i32_0 = arith.constant 0 : i32
    return %arg0, %arg1, %c0_i32 : i32, i32, i32
  }
}

</mosaic_0001>

<bundles_post_ra>
// kernel: tpu_custom_call.1
= control target key start
LH: loop header
LB: loop body
LE: loop exit
PB: predicated region body
PF: predicated region fallthrough
CT: control target
= control target key end

     0   :  { %7 = vsyncpa [#allocation3], 0  ;;  %s694_s0 = inlined_call_operand.vmem [shape: f32[2,4,256], index: 0, kind: input, shape index: {}]   ;;  %s695_s1 = inlined_call_operand.vmem [shape: f32[2,2,4,1], index: 1, kind: input, shape index: {}]   ;;  %s696_s2 = inlined_call_operand.hbm [shape: f32[2,4,256], index: 2, kind: output, shape index: {}]  }
   0x1   :  { %9 = vsyncpa [#allocation3 + $0x1], 0  ;;  %s578_s9 = smov 0   ;;  %s580_s10 = smov 0  }
   0x2   :  { %s582_s11 = smov 0   ;;  %s584_s12 = smov 0  }
   0x3   :  { %s586_s13 = smov 0   ;;  %s588_s14 = smov 0  }
   0x4 LB: > { %s397_s15 = sadd.s32 4294967295, %s558_s14   ;;  %s398_s16 = sadd.s32 4294967294, %s558_s14   ;;  %s558_s14 = sphi %s588_s14, %s15_s14   ;;  %s554_s13 = sphi %s586_s13, %s703_s13   ;;  %s550_s12 = sphi %s584_s12, %s702_s12   ;;  %s546_s11 = sphi %s582_s11, %s701_s11   ;;  %s542_s10 = sphi %s580_s10, %s700_s10   ;;  %s538_s9 = sphi %s578_s9, %s699_s9  }
   0x5   : > { %s27_s17 = sadd.s32 1, %s554_s13  ;;  %s92_s18 = sadd.s32 1, %s546_s11 }
   0x6   : > { %p29_p0 = scmp.ge.s32.totalorder %s27_s17, 2  ;;  %p102_p1 = scmp.ne.s32.totalorder %s546_s11, %s542_s10 }
   0x7   : > { %p103_p2 = scmp.eq.s32.totalorder %s397_s15, 1  ;;  %p108_p3 = scmp.ne.s32.totalorder %s542_s10, %s538_s9 }
   0x8   : > { %s705_s17 = smov (%p29_p0, %s27_s17), 0  ;;  %p109_p5 = scmp.eq.s32.totalorder %s398_s16, 1 }
   0x9   : > { %p618_p4 = por %p103_p2, %p102_p1  ;;  %s87_s20 = ssub.s32 %s554_s13, %s705_s17 }
   0xa   : > { %p401_p6 = scmp.ge.s32.totalorder %s558_s14, 1  ;;  %p90_p7 = scmp.eq.s32.totalorder %s87_s20, 0 }
   0xb   : > { %p625_p8 = por %p109_p5, %p108_p3  ;;  %p150_p9 = scmp.lt.s32.totalorder %s558_s14, 3 }
   0xc   : > { %s631_s22 = scalar_select %p90_p7, %s546_s11, %s92_s18  }
   0xd   : > { %p151_p10 = pnand %p401_p6, %p150_p9 }
   0xe   : > { %p184_p11 = scmp.lt.s32.totalorder (!%p151_p10), %s550_s12, 1  ;;  %s181_s3 = sand.u32 (!%p151_p10), 1, %s542_s10  }
   0xf   : > { %154 = sbr.rel (%p151_p10) target bundleno = 441 (0x1b9), region = 28  ;;  %s402_s4 = sshll.u32 (!%p151_p10), %s181_s3, 3 }
  0x10   : > { %s415_s5 = sshll.u32 (!%p151_p10), %s550_s12, 3  ;;  %s183_s15 = scalar_lea.vmem (!%p151_p10), [#allocation2], %s402_s4 }
  0x11   : > { %s295_s8 = scalar_lea.hbm (!%p151_p10), %s696_s2, %s415_s5  ;;  %s297_s16 = sshll.u32 (!%p151_p10), %s183_s15, 4  ;;  %s298_s16 = int_to_ptr.vmem [resolvable:$true] %s297_s16 }
  0x12   : > { %s299_s18 = sshll.u32 (!%p151_p10), %s295_s8, 4  ;;  %s282_s20 = scalar_lea.sflag (!%p151_p10), [#allocation3], %s181_s3  ;;  %s300_s18 = int_to_ptr.hbm [resolvable:$true] %s299_s18 }
  0x13   : > { %s500_s26 = scalar_lea.hbm (!%p151_p10), %s696_s2, 16 }
  0x14   : > { %s635_s23 = scalar_select %p184_p11, %s550_s12, 1  ;;  %vm208_vm0 = vcmask 1043456   ;;  %v560_v6 = vmov 256.0   ;;  %v561_v12 = vmov 839922192   ;;  %v562_v26 = vmov 0  }
  0x15   : > { %476 = vrcp.f32 %v560_v6  ;;  %v224_v13 = vunpack.c.l.s4 %v561_v12  ;;  %474 = vset.pattern.permute.xlu1 %v562_v26  ;;  %475 = vset.pattern.permute.xlu0 %v562_v26 }
  0x16   : > { %s413_s24 = sshll.u32 %s635_s23, 3  ;;  %s494_s23 = sshra.s32 %s300_s18, 4  ;;  %s495_s23 = int_to_ptr.hbm [resolvable:$true] %s494_s23 }
  0x17   : > { %s192_s27 = scalar_lea.vmem %s694_s0, %s413_s24  ;;  %v225_v15 = vunpack.c.0.s8 %v224_v13  ;;  %s200_s30 = scalar_lea.vmem %s695_s1, %s413_s24 }
  0x18   : > { %v643_v0 = vld [vmem:[%s192_s27] sm:$0xff]  ;;  %s496_s12 = scalar_lea.hbm %s495_s23, 8  ;;  %p501_p1 = scmp.lt.s32.totalorder %s495_s23, %s696_s2 }
  0x19   : > { %203 = vst [vmem:[#allocation1] ss:$2 sm:$0xff] %v643_v0  ;;  %v253_v34 = vld [vmem:[%s200_s30] sm:$0xf]  ;;  %v407_v41 = vld [vmem:[%s200_s30 + $0x4] sm:$0xf]  ;;  %p497_p12 = scmp.ne.s32.totalorder %s495_s23, %s496_s12  ;;  %p502_p2 = scmp.lt.s32.totalorder %s500_s26, %s496_s12 }
  0x1a   : > { %v256_v36 = vadd.f32 1.0, %v253_v34 }
  0x1b   : > { %v477_v7 = vpop.eup %476  ;;  %p498_p13 = pnand %p497_p12, %p618_p4  ;;  %p503_p3 = por %p502_p2, %p501_p1 }
  0x1c   : > { %v215_v8 = vmul.f32 256.0, %v477_v7  ;;  %vm219_vm1 = vweird.f32 %v477_v7 }
  0x1d   : > { %p499_p0 = pneg %p498_p13 }
  0x1e   : > { %v216_v9 = vsub.f32 1.0, %v215_v8 }
  0x1f   : > { %p504_p5 = pnand %p503_p3, %p499_p0 }
  0x20   : > { %v204_v1 = vld.sshfl [vmem:[#allocation1] sm:$0xff pattern:$0x75316420]  ;;  %v205_v2 = vld.sshfl [vmem:[#allocation1 + $0x8] sm:$0xff pattern:$0x75316420]  ;;  %v217_v10 = vmul.f32 %v477_v7, %v216_v9 }
  0x21   : > { %v209_v3 = vsel %vm208_vm0, %v204_v1, 0.0  ;;  %v210_v4 = vsel %vm208_vm0, %v205_v2, 0.0 }
  0x22   : > { %v211_v5 = vadd.f32 %v210_v4, %v209_v3  ;;  %v218_v11 = vadd.f32 %v477_v7, %v217_v10 }
  0x24   : > { %212 = vadd.xlane.f32.xlu0 %v211_v5  ;;  %v220_v14 = vsel %vm219_vm1, %v477_v7, %v218_v11 }
  0x97   : > { %v213_v16 = vpop.xlane.xlu0 %212 }
  0x98   : > { %v221_v17 = vmul.f32 %v220_v14, %v213_v16 }
  0x9a   : > { %v226_v18 = vperm.slane %v221_v17, %v225_v15 }
  0x9c   : > { %v228_v19 = vsub.f32 %v643_v0, %v226_v18 }
  0x9e   : > { %v229_v20 = vmul.f32 %v228_v19, %v228_v19 }
  0xa0   : > { %231 = vst [vmem:[#allocation1] ss:$2 sm:$0xff] %v229_v20 }
  0xa7   : > { %v232_v21 = vld.sshfl [vmem:[#allocation1] sm:$0xff pattern:$0x75316420]  ;;  %v233_v22 = vld.sshfl [vmem:[#allocation1 + $0x8] sm:$0xff pattern:$0x75316420] }
  0xa8   : > { %v236_v23 = vsel %vm208_vm0, %v232_v21, 0.0  ;;  %v237_v24 = vsel %vm208_vm0, %v233_v22, 0.0 }
  0xa9   : > { %v238_v25 = vadd.f32 %v237_v24, %v236_v23 }
  0xab   : > { %239 = vadd.xlane.f32.xlu0 %v238_v25 }
 0x11e   : > { %v240_v27 = vpop.xlane.xlu0 %239 }
 0x11f   : > { %v241_v28 = vmul.f32 %v240_v27, %v220_v14 }
 0x121   : > { %v242_v29 = vadd.f32 1e-05, %v241_v28 }
 0x123   : > { %478 = vrsqrt.f32 %v242_v29  ;;  %vm249_vm3 = vweird.f32 %v242_v29 }
 0x129   : > { %v479_v30 = vpop.eup %478 }
 0x12a   : > { %v244_v31 = vmul.f32 %v479_v30, %v242_v29  ;;  %vm250_vm2 = vweird.f32 %v479_v30 }
 0x12b   : > { %vm251_vm4 = vmor %vm249_vm3, %vm250_vm2 }
 0x12c   : > { %v245_v32 = vmul.f32 %v479_v30, %v244_v31 }
 0x12e   : > { %v246_v33 = vmul.f32 0.5, %v245_v32 }
 0x130   : > { %v247_v35 = vsub.f32 1.5, %v246_v33 }
 0x132   : > { %v248_v37 = vmul.f32 %v479_v30, %v247_v35 }
 0x134   : > { %v252_v38 = vsel %vm251_vm4, %v479_v30, %v248_v37 }
 0x135   : > { %v257_v39 = vmul.f32 %v256_v36, %v252_v38 }
 0x137   : > { %262 = vperm.xlu1 %474, %v257_v39   ;;  %v258_v40 = vmul.f32 %v257_v39, %v221_v17 }
 0x139   : > { %v259_v42 = vsub.f32 %v407_v41, %v258_v40 }
 0x13f   : > { %272 = vperm.xlu1 %474, %v259_v42  }
 0x1a9   : > { %v263_v43 = vpop.permute.xlu1 %262 }
 0x1aa   : > { %v267_v44 = vperm.slane %v263_v43, %v225_v15 }
 0x1ac   : > { %v269_v46 = vmul.f32 %v267_v44, %v643_v0 }
 0x1b1   : > { %v273_v45 = vpop.permute.xlu1 %272 }
 0x1b2   : > { %v277_v47 = vperm.slane %v273_v45, %v225_v15 }
 0x1b4   : > { %v279_v48 = vadd.f32 %v277_v47, %v269_v46 }
 0x1b6   : > { %280 = vst [vmem:[%s183_s15] sm:$0xff] %v279_v48 }
 0x1b7   : > { %507 = shalt.err (!%p504_p5)
}
 0x1b8   : > { %416 = dma.vmem_to_hbm [thread:$0]  (%p618_p4), %s298_s16, 128, %s300_s18, %s282_s20  }
 0x1b9 PF: > { %p422_p6 = scmp.ge.s32.totalorder %s558_s14, 2  ;;  %s311_s29 = sand.u32 1, %s538_s9  }
 0x1ba   : > { %s312_s30 = scalar_lea.sflag [#allocation3], %s311_s29 }
 0x1bb   : > { %p419_p7 = pnand %p422_p6, %p625_p8 }
 0x1bd   : > { %p420_p9 = pneg %p419_p7 }
 0x1bf   : > { %533 = dma.done.wait (%p420_p9), %s312_s30, 128  }
 0x1c0   : > { %535 = vsyncadd (%p420_p9), %s312_s30, 4294967168  ;;  %s15_s14 = sadd.s32 1, %s558_s14   ;;  %s699_s9 = smov %s542_s10 }
 0x1c1   : > { %p12_p10 = scmp.ge.s32.totalorder %s15_s14, 4   ;;  %s700_s10 = smov %s546_s11 }
 0x1c2   : > { %s701_s11 = smov %s631_s22  ;;  %s702_s12 = smov %s554_s13 }
 0x1c3   : > { %s703_s13 = smov %s705_s17  ;;  %14 = sbr.rel (!%p12_p10) target bundleno = 4 (0x4), region = 67 }
 0x1c8   :  { %318 = vsyncpa [#allocation3], 1 }
 0x1c9   :  { %320 = vsyncpa [#allocation3 + $0x1], 1 }

</bundles_post_ra>
